<compile_context>
chip_gen: v5e
topology: v5e:2x2
jax: 0.10.0
libtpu: 0.0.40
codegen_flags: <defaults>
</compile_context>

<pallas_src>
import jax
import jax.numpy as jnp
from jax.experimental import pallas as pl
from jax.experimental.pallas import tpu as pltpu


def linear_kernel(w_ref, b_ref, x_ref, o_ref):
    # w_ref: [2] f32 in SMEM, b_ref: [1] f32 in SMEM
    # x_ref: [2, TILE_N] VMEM tile (features on sublanes, batch on lanes)
    # o_ref: [1, TILE_N] VMEM tile
    w0 = w_ref[0]
    w1 = w_ref[1]
    b = b_ref[0]
    x = x_ref[...]                                   # [2, TILE_N]
    # Pure sublane indexing + scalar broadcasts: two VPU multiply-adds per lane.
    y = w0 * x[0:1, :] + w1 * x[1:2, :] + b          # [1, TILE_N]
    o_ref[...] = y.astype(o_ref.dtype)


def linear_forward(x, weight, bias, *, tile_n=512):
    """x: [n, 2] f32, weight: [1, 2] f32 (torch [out, in] layout), bias: [1] f32.
    Returns y: [n, 1] f32 (== x @ weight.T + bias)."""
    n, in_f = x.shape
    out_f = weight.shape[0]
    assert in_f == 2 and out_f == 1, "kernel is specialized to Linear(2, 1)"

    # Lane-dense layout: features -> sublanes, batch -> lanes; pad batch to a
    # multiple of the lane tile.
    n_pad = ((n + tile_n - 1) // tile_n) * tile_n
    xt = jnp.zeros((in_f, n_pad), x.dtype).at[:, :n].set(x.T)
    # TODO(synk): for very large n, the wrapper transpose could be avoided by
    # consuming the row-major interleaved [n/64, 128] view and pair-summing
    # adjacent lanes with pltpu.roll; the streaming DMA cost is identical.

    w_s = weight.reshape(in_f).astype(jnp.float32)
    b_s = bias.reshape(out_f).astype(jnp.float32)

    yt = pl.pallas_call(
        linear_kernel,
        out_shape=jax.ShapeDtypeStruct((1, n_pad), x.dtype),
        grid=(n_pad // tile_n,),
        in_specs=[
            pl.BlockSpec(memory_space=pltpu.MemorySpace.SMEM),   # weight (2,)
            pl.BlockSpec(memory_space=pltpu.MemorySpace.SMEM),   # bias   (1,)
            pl.BlockSpec((in_f, tile_n), lambda i: (0, i)),      # x  [2, TILE_N]
        ],
        out_specs=pl.BlockSpec((1, tile_n), lambda i: (0, i)),   # y  [1, TILE_N]
        compiler_params=pltpu.CompilerParams(
            dimension_semantics=("parallel",)),
    )(w_s, b_s, xt)

    # [1, n_pad] -> [n_pad, 1] is a free row-major reshape; drop the padding.
    return yt.reshape(n_pad, 1)[:n]


if __name__ == "__main__":
    key = jax.random.PRNGKey(0)

    # Module shapes: Linear(in_features=2, out_features=1); batch n=2.
    n, in_f, out_f = 2, 2, 1

    kx, kw, kb = jax.random.split(key, 3)
    x = jax.random.normal(kx, (n, in_f), dtype=jnp.float32)
    weight = jax.random.normal(kw, (out_f, in_f), dtype=jnp.float32) * 0.5
    bias = jax.random.normal(kb, (out_f,), dtype=jnp.float32) * 0.1

    y = linear_forward(x, weight, bias)
    y = jax.block_until_ready(y)

    # Reference check (same semantics as torch.nn.Linear forward).
    y_ref = x @ weight.T + bias
    assert y.shape == (n, out_f)
    assert jnp.allclose(y, y_ref, atol=1e-5), (y, y_ref)

    print("KERNEL_OK")
</pallas_src>

<mosaic_0001>
module attributes {stable_mosaic.version = 11 : i64} {
  func.func @linear_kernel(%arg0: i32, %arg1: memref<2xf32, #tpu.memory_space<smem>>, %arg2: memref<1xf32, #tpu.memory_space<smem>>, %arg3: memref<2x512xf32, #tpu.memory_space<vmem>>, %arg4: memref<1x512xf32, #tpu.memory_space<vmem>>) attributes {dimension_semantics = [#tpu.dimension_semantics<parallel>], iteration_bounds = array<i64: 1>, scalar_prefetch = 0 : i64, scratch_operands = 0 : i64, tpu.core_type = #tpu.core_type<tc>, window_params = [{transform_indices = @transform_0, window_bounds = array<i64: 2>}, {transform_indices = @transform_1, window_bounds = array<i64: 1>}, {transform_indices = @transform_2, window_bounds = array<i64: 2, 512>}, {transform_indices = @transform_3, window_bounds = array<i64: 1, 512>}]} {
    %c0 = arith.constant 0 : index
    %0 = memref.load %arg1[%c0] : memref<2xf32, #tpu.memory_space<smem>>
    %c1 = arith.constant 1 : index
    %1 = memref.load %arg1[%c1] : memref<2xf32, #tpu.memory_space<smem>>
    %c0_0 = arith.constant 0 : index
    %2 = memref.load %arg2[%c0_0] : memref<1xf32, #tpu.memory_space<smem>>
    %c0_1 = arith.constant 0 : index
    %c0_2 = arith.constant 0 : index
    %3 = vector.load %arg3[%c0_1, %c0_2] : memref<2x512xf32, #tpu.memory_space<vmem>>, vector<2x512xf32>
    %4 = vector.extract_strided_slice %3 {offsets = [0, 0], sizes = [1, 512], strides = [1, 1]} : vector<2x512xf32> to vector<1x512xf32>
    %5 = vector.broadcast %0 : f32 to vector<1x512xf32>
    %6 = arith.mulf %5, %4 : vector<1x512xf32>
    %7 = vector.extract_strided_slice %3 {offsets = [1, 0], sizes = [1, 512], strides = [1, 1]} : vector<2x512xf32> to vector<1x512xf32>
    %8 = vector.broadcast %1 : f32 to vector<1x512xf32>
    %9 = arith.mulf %8, %7 : vector<1x512xf32>
    %10 = arith.addf %6, %9 : vector<1x512xf32>
    %11 = vector.broadcast %2 : f32 to vector<1x512xf32>
    %12 = arith.addf %10, %11 : vector<1x512xf32>
    %c0_3 = arith.constant 0 : index
    %c0_4 = arith.constant 0 : index
    %13 = vector.load %arg4[%c0_3, %c0_4] : memref<1x512xf32, #tpu.memory_space<vmem>>, vector<1x512xf32>
    tpu.vector_store %arg4[%c0_3, %c0_4], %12 {strides = array<i32>} : memref<1x512xf32, #tpu.memory_space<vmem>>, vector<1x512xf32>,
    return
  }
  func.func @transform_0(%arg0: i32) -> i32 {
    %c0_i32 = arith.constant 0 : i32
    %c0_i32_0 = arith.constant 0 : i32
    return %c0_i32 : i32
  }
  func.func @transform_1(%arg0: i32) -> i32 {
    %c0_i32 = arith.constant 0 : i32
    %c0_i32_0 = arith.constant 0 : i32
    return %c0_i32 : i32
  }
  func.func @transform_2(%arg0: i32) -> (i32, i32) {
    %c0_i32 = arith.constant 0 : i32
    %c0_i32_0 = arith.constant 0 : i32
    return %c0_i32, %arg0 : i32, i32
  }
  func.func @transform_3(%arg0: i32) -> (i32, i32) {
    %c0_i32 = arith.constant 0 : i32
    %c0_i32_0 = arith.constant 0 : i32
    return %c0_i32, %arg0 : i32, i32
  }
}

</mosaic_0001>

<bundles_post_ra>
// kernel: tpu_custom_call.1
= control target key start
LH: loop header
LB: loop body
LE: loop exit
PB: predicated region body
PF: predicated region fallthrough
CT: control target
= control target key end

     0   :  { %9 = vsyncpa [#allocation6], 0  ;;  %s198_s0 = inlined_call_operand.vmem [shape: f32[2], index: 0, kind: input, shape index: {}]   ;;  %s199_s1 = inlined_call_operand.<no memory space> [shape: f32[1], index: 1, kind: input, shape index: {}]   ;;  %s200_s2 = inlined_call_operand.hbm [shape: f32[2,512], index: 2, kind: input, shape index: {}]   ;;  %s201_s3 = inlined_call_operand.hbm [shape: f32[1,512], index: 3, kind: output, shape index: {}]  }
   0x1   :  { %10 = vsyncpa [#allocation4], 0 }
   0x2   :  { %11 = vsyncpa [#allocation5], 0  ;;  %s17_s14 = sshll.u32 %s198_s0, 4  ;;  %s28_s17 = sshll.u32 %s200_s2, 4  ;;  %s18_s14 = int_to_ptr.vmem [resolvable:$true] %s17_s14  ;;  %s29_s17 = int_to_ptr.hbm [resolvable:$true] %s28_s17 }
   0x3   :  { %s163_s18 = smov [#allocation3]   ;;  %s164_s19 = smov [#allocation7]  }
   0x4   :  { %20 = dma.vmem_to_smem %s18_s14, 16, %s163_s18, [#allocation6]  }
   0x5   :  { %s30_s20 = sshll.u32 %s164_s19, 4  ;;  %s31_s20 = int_to_ptr.vmem [resolvable:$true] %s30_s20 }
   0x6   :  { %33 = dma.hbm_to_vmem [thread:$0]  %s29_s17, 128, %s31_s20, [#allocation4]  }
   0x7   :  { %157 = dma.done.wait [#allocation6], 16  }
   0x8   :  { %158 = vsyncadd [#allocation6], 4294967280 }
   0x9   :  { %159 = dma.done.wait [#allocation4], 128  }
   0xa   :  { %160 = vsyncadd [#allocation4], 4294967168 }
   0xb   :  { %42 = sfence }
   0xc   :  { %s43_s21 = sld [smem:[#allocation3]]  ;;  %v46_v0 = vld [vmem:[#allocation7] sm:$0xff]  ;;  %v56_v6 = vstv %s199_s1  ;;  %v69_v8 = vlaneseq  ;;  %vm62_vm0 = vcmask 1040384   ;;  %vm64_vm1 = vcmask 1042434   ;;  %s165_s23 = smov [#allocation8]  }
   0xd   :  { %s92_s22 = sld [smem:[#allocation3 + $0x1]]  ;;  %s79_s24 = sshll.u32 %s165_s23, 4  ;;  %vm66_vm2 = vcmask 1041408   ;;  %s80_s24 = int_to_ptr.vmem [resolvable:$true] %s79_s24 }
   0xe   :  { %s81_s27 = sshll.u32 %s201_s3, 4  ;;  %vm71_vm3 = vcmp.lt.s32.totalorder %v69_v8, 512  ;;  %s82_s27 = int_to_ptr.hbm [resolvable:$true] %s81_s27 }
  0x12   :  { %v47_v1 = vstv %s43_s21 }
  0x13   :  { %v49_v2 = vstv %s92_s22  ;;  %v48_v3 = vmul.f32 %v47_v1, %v46_v0 }
  0x14   :  { %v50_v4 = vmul.f32 %v49_v2, %v46_v0 }
  0x16   :  { %v93_v5 = vrot.slane %v50_v4, 9 }
  0x18   :  { %v55_v7 = vadd.f32 %v93_v5, %v48_v3 }
  0x1a   :  { %v57_v9 = vadd.f32 %v56_v6, %v55_v7 }
  0x1c   :  { %v59_v10 = vrot.slane %v57_v9, 1  ;;  %v60_v11 = vrot.slane %v57_v9, 2  ;;  %v61_v12 = vrot.slane %v57_v9, 3 }
  0x1e   :  { %v63_v13 = vsel %vm62_vm0, %v57_v9, %v59_v10  ;;  %v65_v14 = vsel %vm64_vm1, %v60_v11, %v61_v12 }
  0x1f   :  { %v67_v15 = vsel %vm66_vm2, %v63_v13, %v65_v14 }
  0x20   :  { %73 = vst.msk [vmem:[#allocation8] sm:$0xf] %vm71_vm3, %v67_v15 }
  0x21   :  { %84 = dma.vmem_to_hbm [thread:$0]  %s80_s24, 64, %s82_s27, [#allocation5]  }
  0x22   :  { %161 = dma.done.wait [#allocation5], 64  }
  0x23   :  { %162 = vsyncadd [#allocation5], 4294967232 }
  0x24   :  { %89 = vsyncpa [#allocation4], 1 }
  0x25   :  { %90 = vsyncpa [#allocation5], 1 }
  0x26   :  { %91 = vsyncpa [#allocation6], 1 }

</bundles_post_ra>
